<compile_context>
chip_gen: v5e
topology: v5e:2x2
jax: 0.10.0
libtpu: 0.0.40
codegen_flags: <defaults>
</compile_context>

<pallas_src>
import functools

import jax
import jax.numpy as jnp
from jax.experimental import pallas as pl
from jax.experimental.pallas import tpu as pltpu


# ----------------------------- fused Pallas kernel --------------------------

def _mha_fused_kernel(x_ref, wqkv_ref, bqkv_ref, wproj_ref, bproj_ref, o_ref,
                      *, inv_scale):
    # x_ref:     (N, E)        one batch, lane-dense
    # wqkv_ref:  (3, H, E, D)  [q|k|v] per-head projection weights
    # bqkv_ref:  (3, H, 1, D)  per-head biases
    # wproj_ref: (H, D, E)     output projection (head-merge folded into contraction)
    # bproj_ref: (1, E)
    # o_ref:     (N, E)        lane-dense output block
    N, E = x_ref.shape
    H = wqkv_ref.shape[1]

    x = x_ref[...].astype(jnp.float32)                        # (N, E)
    xb = jnp.broadcast_to(x[None], (H, N, E))                 # (H, N, E), leading-dim bcast

    # qkv projection, batched over heads — no in-kernel reshape/transpose needed.
    q = jnp.einsum('hne,hed->hnd', xb, wqkv_ref[0],
                   preferred_element_type=jnp.float32) + bqkv_ref[0]     # (H, N, D)
    k = jnp.einsum('hne,hed->hnd', xb, wqkv_ref[1],
                   preferred_element_type=jnp.float32) + bqkv_ref[1]     # (H, N, D)
    v = jnp.einsum('hne,hed->hnd', xb, wqkv_ref[2],
                   preferred_element_type=jnp.float32) + bqkv_ref[2]     # (H, N, D)

    # energy[h,q,k] = <q_h, k_h>  (contract last dims; k consumed in stored layout)
    energy = jnp.einsum('hqd,hkd->hqk', q, k,
                        preferred_element_type=jnp.float32)              # (H, N, N)

    # Numerically-stable softmax over keys; the post-softmax 1/sqrt(E) scale is
    # folded into the (H,N,1) reciprocal factor (EUP) — no extra full-tile multiply.
    m = jnp.max(energy, axis=-1, keepdims=True)
    e = jnp.exp(energy - m)
    s = jnp.sum(e, axis=-1, keepdims=True)
    att = e * (pl.reciprocal(s, approx=True) * inv_scale)                # (H, N, N)
    # dropout == identity (eval mode)

    ctx = jnp.einsum('hqk,hkd->hqd', att, v,
                     preferred_element_type=jnp.float32)                 # (H, N, D)

    # Output projection with 'b h n d -> b n (h d)' folded into the contraction:
    #   out[n, e] = sum_h sum_d ctx[h, n, d] * W_proj[h*D + d, e] + b_proj[e]
    proj = jnp.einsum('hnd,hde->hne', ctx, wproj_ref[...],
                      preferred_element_type=jnp.float32)                # (H, N, E)
    out = jnp.sum(proj, axis=0) + bproj_ref[...]                         # (N, E)
    o_ref[...] = out.astype(o_ref.dtype)


# ----------------------------- wrapper ---------------------------------------

def multi_head_attention(x, params, num_heads):
    """Full fused forward pass. x: (B, N, E)."""
    B, N, E = x.shape
    H = num_heads
    D = E // H

    # Repack weights once (tiny trace-time XLA ops) so the kernel sees per-head
    # layouts and needs no activation reshapes:
    #   qkv Linear output columns are ordered (h, d, qkv) with `qkv` fastest.
    w_qkv = params["w_qkv"].reshape(E, H, D, 3).transpose(3, 1, 0, 2)     # (3, H, E, D)
    b_qkv = params["b_qkv"].reshape(H, D, 3).transpose(2, 0, 1).reshape(3, H, 1, D)
    #   projection input rows are ordered (h, d) with d fastest.
    w_proj = params["w_proj"].reshape(H, D, E)                            # (H, D, E)
    b_proj = params["b_proj"].reshape(1, E)                               # (1, E)

    kern = functools.partial(_mha_fused_kernel,
                             inv_scale=1.0 / (float(E) ** 0.5))

    return pl.pallas_call(
        kern,
        out_shape=jax.ShapeDtypeStruct((B, N, E), x.dtype),
        grid=(B,),
        in_specs=[
            pl.BlockSpec((None, N, E), lambda b: (b, 0, 0)),        # x (per batch)
            pl.BlockSpec((3, H, E, D), lambda b: (0, 0, 0, 0)),     # qkv weights
            pl.BlockSpec((3, H, 1, D), lambda b: (0, 0, 0, 0)),     # qkv biases
            pl.BlockSpec((H, D, E), lambda b: (0, 0, 0)),           # proj weight
            pl.BlockSpec((1, E), lambda b: (0, 0)),                 # proj bias
        ],
        out_specs=pl.BlockSpec((None, N, E), lambda b: (b, 0, 0)),  # lane-dense (N, E)
        compiler_params=pltpu.CompilerParams(
            dimension_semantics=("parallel",)),                     # 2-way for v7x dual TC
    )(x, w_qkv, b_qkv, w_proj, b_proj)


# ----------------------------- reference (pure JAX) ---------------------------

def reference_mha(x, params, num_heads):
    B, N, E = x.shape
    H = num_heads
    D = E // H
    qkv = x @ params["w_qkv"] + params["b_qkv"]
    qkv = qkv.reshape(B, N, H, D, 3)
    qkv = jnp.transpose(qkv, (4, 0, 2, 1, 3))
    q, k, v = qkv[0], qkv[1], qkv[2]
    energy = jnp.einsum("bhqd,bhkd->bhqk", q, k)
    att = jax.nn.softmax(energy, axis=-1) / (E ** 0.5)
    out = jnp.einsum("bhal,bhlv->bhav", att, v)
    out = jnp.transpose(out, (0, 2, 1, 3)).reshape(B, N, E)
    return out @ params["w_proj"] + params["b_proj"]


# ----------------------------- main --------------------------------------------

if __name__ == "__main__":
    # Small shapes consistent with the module: emb_size=32, num_heads=8, seq=8, batch=2.
    B, N, E, H = 2, 8, 32, 8

    key = jax.random.PRNGKey(0)
    kx, k1, k2, k3, k4 = jax.random.split(key, 5)

    x = jax.random.normal(kx, (B, N, E), dtype=jnp.float32)

    # Deterministic synthetic parameters (shapes from nn.Linear(E, 3E) / nn.Linear(E, E)).
    # Stored as (in, out) so the math is x @ W + b  (== PyTorch x @ W_t.T + b).
    params = {
        "w_qkv":  jax.random.normal(k1, (E, 3 * E), dtype=jnp.float32) * 0.05,
        "b_qkv":  jax.random.normal(k2, (3 * E,),   dtype=jnp.float32) * 0.05,
        "w_proj": jax.random.normal(k3, (E, E),     dtype=jnp.float32) * 0.05,
        "b_proj": jax.random.normal(k4, (E,),       dtype=jnp.float32) * 0.05,
    }

    out = jax.block_until_ready(multi_head_attention(x, params, num_heads=H))
    ref = jax.block_until_ready(reference_mha(x, params, num_heads=H))

    assert out.shape == (B, N, E)
    # Tolerance leaves headroom for the EUP approximate reciprocal in the softmax.
    max_err = float(jnp.max(jnp.abs(out - ref)))
    assert jnp.allclose(out, ref, atol=1e-3, rtol=1e-3), (
        f"mismatch vs pure-JAX reference (max abs err = {max_err})")

    print("KERNEL_OK")
</pallas_src>

<mosaic_0001>
module attributes {stable_mosaic.version = 11 : i64} {
  func.func @_mha_fused_kernel(%arg0: i32, %arg1: memref<1x8x32xf32, #tpu.memory_space<vmem>>, %arg2: memref<3x8x32x4xf32, #tpu.memory_space<vmem>>, %arg3: memref<3x8x1x4xf32, #tpu.memory_space<vmem>>, %arg4: memref<8x4x32xf32, #tpu.memory_space<vmem>>, %arg5: memref<1x32xf32, #tpu.memory_space<vmem>>, %arg6: memref<1x8x32xf32, #tpu.memory_space<vmem>>) attributes {dimension_semantics = [#tpu.dimension_semantics<parallel>], iteration_bounds = array<i64: 2>, scalar_prefetch = 0 : i64, scratch_operands = 0 : i64, tpu.core_type = #tpu.core_type<tc>, window_params = [{transform_indices = @transform_0, window_bounds = array<i64: 1, 8, 32>}, {pipeline_mode = #tpu.pipeline_mode<synchronous>, transform_indices = @transform_1, window_bounds = array<i64: 3, 8, 32, 4>}, {pipeline_mode = #tpu.pipeline_mode<synchronous>, transform_indices = @transform_2, window_bounds = array<i64: 3, 8, 1, 4>}, {pipeline_mode = #tpu.pipeline_mode<synchronous>, transform_indices = @transform_3, window_bounds = array<i64: 8, 4, 32>}, {pipeline_mode = #tpu.pipeline_mode<synchronous>, transform_indices = @transform_4, window_bounds = array<i64: 1, 32>}, {transform_indices = @transform_5, window_bounds = array<i64: 1, 8, 32>}]} {
    %c0 = arith.constant 0 : index
    %c0_0 = arith.constant 0 : index
    %c0_1 = arith.constant 0 : index
    %0 = vector.load %arg1[%c0, %c0_0, %c0_1] : memref<1x8x32xf32, #tpu.memory_space<vmem>>, vector<1x8x32xf32>
    %1 = vector.shape_cast %0 : vector<1x8x32xf32> to vector<8x32xf32>
    %2 = vector.shape_cast %1 : vector<8x32xf32> to vector<1x8x32xf32>
    %3 = vector.shape_cast %2 : vector<1x8x32xf32> to vector<1x8x32xf32>
    %4 = vector.broadcast %3 : vector<1x8x32xf32> to vector<8x8x32xf32>
    %c0_2 = arith.constant 0 : index
    %c0_3 = arith.constant 0 : index
    %c0_4 = arith.constant 0 : index
    %c0_5 = arith.constant 0 : index
    %5 = vector.load %arg2[%c0_2, %c0_3, %c0_4, %c0_5] : memref<3x8x32x4xf32, #tpu.memory_space<vmem>>, vector<1x8x32x4xf32>
    %6 = vector.shape_cast %5 : vector<1x8x32x4xf32> to vector<8x32x4xf32>
    "tpu.trace_start"() <{level = 10 : i32, message = "hne,hed->hnd"}> : () -> ()
    %cst = arith.constant dense<0.000000e+00> : vector<8x8x4xf32>
    %7 = tpu.matmul %4, %6, %cst {dimension_numbers = #tpu.dot_dimension_numbers<[2], [1], [1], [2], [0, 0, 0, 1, 1, 2], [0], [0]>} : vector<8x8x32xf32>, vector<8x32x4xf32>, vector<8x8x4xf32> -> vector<8x8x4xf32>
    "tpu.trace_stop"() : () -> ()
    %c0_6 = arith.constant 0 : index
    %c0_7 = arith.constant 0 : index
    %c0_8 = arith.constant 0 : index
    %c0_9 = arith.constant 0 : index
    %8 = vector.load %arg3[%c0_6, %c0_7, %c0_8, %c0_9] : memref<3x8x1x4xf32, #tpu.memory_space<vmem>>, vector<1x8x1x4xf32>
    %9 = vector.shape_cast %8 : vector<1x8x1x4xf32> to vector<8x1x4xf32>
    %10 = vector.broadcast %9 : vector<8x1x4xf32> to vector<8x8x4xf32>
    %11 = arith.addf %7, %10 : vector<8x8x4xf32>
    %c1 = arith.constant 1 : index
    %c0_10 = arith.constant 0 : index
    %c0_11 = arith.constant 0 : index
    %c0_12 = arith.constant 0 : index
    %12 = vector.load %arg2[%c1, %c0_10, %c0_11, %c0_12] : memref<3x8x32x4xf32, #tpu.memory_space<vmem>>, vector<1x8x32x4xf32>
    %13 = vector.shape_cast %12 : vector<1x8x32x4xf32> to vector<8x32x4xf32>
    "tpu.trace_start"() <{level = 10 : i32, message = "hne,hed->hnd"}> : () -> ()
    %cst_13 = arith.constant dense<0.000000e+00> : vector<8x8x4xf32>
    %14 = tpu.matmul %4, %13, %cst_13 {dimension_numbers = #tpu.dot_dimension_numbers<[2], [1], [1], [2], [0, 0, 0, 1, 1, 2], [0], [0]>} : vector<8x8x32xf32>, vector<8x32x4xf32>, vector<8x8x4xf32> -> vector<8x8x4xf32>
    "tpu.trace_stop"() : () -> ()
    %c1_14 = arith.constant 1 : index
    %c0_15 = arith.constant 0 : index
    %c0_16 = arith.constant 0 : index
    %c0_17 = arith.constant 0 : index
    %15 = vector.load %arg3[%c1_14, %c0_15, %c0_16, %c0_17] : memref<3x8x1x4xf32, #tpu.memory_space<vmem>>, vector<1x8x1x4xf32>
    %16 = vector.shape_cast %15 : vector<1x8x1x4xf32> to vector<8x1x4xf32>
    %17 = vector.broadcast %16 : vector<8x1x4xf32> to vector<8x8x4xf32>
    %18 = arith.addf %14, %17 : vector<8x8x4xf32>
    %c2 = arith.constant 2 : index
    %c0_18 = arith.constant 0 : index
    %c0_19 = arith.constant 0 : index
    %c0_20 = arith.constant 0 : index
    %19 = vector.load %arg2[%c2, %c0_18, %c0_19, %c0_20] : memref<3x8x32x4xf32, #tpu.memory_space<vmem>>, vector<1x8x32x4xf32>
    %20 = vector.shape_cast %19 : vector<1x8x32x4xf32> to vector<8x32x4xf32>
    "tpu.trace_start"() <{level = 10 : i32, message = "hne,hed->hnd"}> : () -> ()
    %cst_21 = arith.constant dense<0.000000e+00> : vector<8x8x4xf32>
    %21 = tpu.matmul %4, %20, %cst_21 {dimension_numbers = #tpu.dot_dimension_numbers<[2], [1], [1], [2], [0, 0, 0, 1, 1, 2], [0], [0]>} : vector<8x8x32xf32>, vector<8x32x4xf32>, vector<8x8x4xf32> -> vector<8x8x4xf32>
    "tpu.trace_stop"() : () -> ()
    %c2_22 = arith.constant 2 : index
    %c0_23 = arith.constant 0 : index
    %c0_24 = arith.constant 0 : index
    %c0_25 = arith.constant 0 : index
    %22 = vector.load %arg3[%c2_22, %c0_23, %c0_24, %c0_25] : memref<3x8x1x4xf32, #tpu.memory_space<vmem>>, vector<1x8x1x4xf32>
    %23 = vector.shape_cast %22 : vector<1x8x1x4xf32> to vector<8x1x4xf32>
    %24 = vector.broadcast %23 : vector<8x1x4xf32> to vector<8x8x4xf32>
    %25 = arith.addf %21, %24 : vector<8x8x4xf32>
    "tpu.trace_start"() <{level = 10 : i32, message = "hqd,hkd->hqk"}> : () -> ()
    %cst_26 = arith.constant dense<0.000000e+00> : vector<8x8x8xf32>
    %26 = tpu.matmul %11, %18, %cst_26 {dimension_numbers = #tpu.dot_dimension_numbers<[2], [2], [1], [1], [0, 0, 0, 1, 1, 1], [0], [0]>} : vector<8x8x4xf32>, vector<8x8x4xf32>, vector<8x8x8xf32> -> vector<8x8x8xf32>
    "tpu.trace_stop"() : () -> ()
    %cst_27 = arith.constant dense<0xFF800000> : vector<8x8xf32>
    %27 = vector.multi_reduction <maximumf>, %26, %cst_27 [2] : vector<8x8x8xf32> to vector<8x8xf32>
    %28 = vector.shape_cast %27 : vector<8x8xf32> to vector<8x8x1xf32>
    %29 = vector.broadcast %28 : vector<8x8x1xf32> to vector<8x8x8xf32>
    %30 = arith.subf %26, %29 : vector<8x8x8xf32>
    %31 = math.exp %30 : vector<8x8x8xf32>
    %cst_28 = arith.constant dense<0.000000e+00> : vector<8x8xf32>
    %32 = vector.multi_reduction <add>, %31, %cst_28 [2] : vector<8x8x8xf32> to vector<8x8xf32>
    %33 = vector.shape_cast %32 : vector<8x8xf32> to vector<8x8x1xf32>
    %34 = tpu.reciprocal %33 {approx = true} : vector<8x8x1xf32> -> vector<8x8x1xf32>
    %cst_29 = arith.constant 0.176776692 : f32
    %35 = vector.broadcast %cst_29 : f32 to vector<8x8x1xf32>
    %36 = arith.mulf %34, %35 : vector<8x8x1xf32>
    %37 = vector.broadcast %36 : vector<8x8x1xf32> to vector<8x8x8xf32>
    %38 = arith.mulf %31, %37 : vector<8x8x8xf32>
    "tpu.trace_start"() <{level = 10 : i32, message = "hqk,hkd->hqd"}> : () -> ()
    %cst_30 = arith.constant dense<0.000000e+00> : vector<8x8x4xf32>
    %39 = tpu.matmul %38, %25, %cst_30 {dimension_numbers = #tpu.dot_dimension_numbers<[2], [1], [1], [2], [0, 0, 0, 1, 1, 2], [0], [0]>} : vector<8x8x8xf32>, vector<8x8x4xf32>, vector<8x8x4xf32> -> vector<8x8x4xf32>
    "tpu.trace_stop"() : () -> ()
    %c0_31 = arith.constant 0 : index
    %c0_32 = arith.constant 0 : index
    %c0_33 = arith.constant 0 : index
    %40 = vector.load %arg4[%c0_31, %c0_32, %c0_33] : memref<8x4x32xf32, #tpu.memory_space<vmem>>, vector<8x4x32xf32>
    "tpu.trace_start"() <{level = 10 : i32, message = "hnd,hde->hne"}> : () -> ()
    %cst_34 = arith.constant dense<0.000000e+00> : vector<8x8x32xf32>
    %41 = tpu.matmul %39, %40, %cst_34 {dimension_numbers = #tpu.dot_dimension_numbers<[2], [1], [1], [2], [0, 0, 0, 1, 1, 2], [0], [0]>} : vector<8x8x4xf32>, vector<8x4x32xf32>, vector<8x8x32xf32> -> vector<8x8x32xf32>
    "tpu.trace_stop"() : () -> ()
    %cst_35 = arith.constant dense<0.000000e+00> : vector<8x32xf32>
    %42 = vector.multi_reduction <add>, %41, %cst_35 [0] : vector<8x8x32xf32> to vector<8x32xf32>
    %c0_36 = arith.constant 0 : index
    %c0_37 = arith.constant 0 : index
    %43 = vector.load %arg5[%c0_36, %c0_37] : memref<1x32xf32, #tpu.memory_space<vmem>>, vector<1x32xf32>
    %44 = vector.broadcast %43 : vector<1x32xf32> to vector<8x32xf32>
    %45 = arith.addf %42, %44 : vector<8x32xf32>
    %c0_38 = arith.constant 0 : index
    %c0_39 = arith.constant 0 : index
    %c0_40 = arith.constant 0 : index
    %46 = vector.load %arg6[%c0_38, %c0_39, %c0_40] : memref<1x8x32xf32, #tpu.memory_space<vmem>>, vector<1x8x32xf32>
    %47 = vector.shape_cast %46 : vector<1x8x32xf32> to vector<8x32xf32>
    %48 = vector.shape_cast %45 : vector<8x32xf32> to vector<1x8x32xf32>
    tpu.vector_store %arg6[%c0_38, %c0_39, %c0_40], %48 {strides = array<i32>} : memref<1x8x32xf32, #tpu.memory_space<vmem>>, vector<1x8x32xf32>,
    return
  }
  func.func @transform_0(%arg0: i32) -> (i32, i32, i32) {
    %c0_i32 = arith.constant 0 : i32
    %c0_i32_0 = arith.constant 0 : i32
    %c0_i32_1 = arith.constant 0 : i32
    return %arg0, %c0_i32, %c0_i32_0 : i32, i32, i32
  }
  func.func @transform_1(%arg0: i32) -> (i32, i32, i32, i32) {
    %c0_i32 = arith.constant 0 : i32
    %c0_i32_0 = arith.constant 0 : i32
    %c0_i32_1 = arith.constant 0 : i32
    %c0_i32_2 = arith.constant 0 : i32
    %c0_i32_3 = arith.constant 0 : i32
    return %c0_i32, %c0_i32_0, %c0_i32_1, %c0_i32_2 : i32, i32, i32, i32
  }
  func.func @transform_2(%arg0: i32) -> (i32, i32, i32, i32) {
    %c0_i32 = arith.constant 0 : i32
    %c0_i32_0 = arith.constant 0 : i32
    %c0_i32_1 = arith.constant 0 : i32
    %c0_i32_2 = arith.constant 0 : i32
    %c0_i32_3 = arith.constant 0 : i32
    return %c0_i32, %c0_i32_0, %c0_i32_1, %c0_i32_2 : i32, i32, i32, i32
  }
  func.func @transform_3(%arg0: i32) -> (i32, i32, i32) {
    %c0_i32 = arith.constant 0 : i32
    %c0_i32_0 = arith.constant 0 : i32
    %c0_i32_1 = arith.constant 0 : i32
    %c0_i32_2 = arith.constant 0 : i32
    return %c0_i32, %c0_i32_0, %c0_i32_1 : i32, i32, i32
  }
  func.func @transform_4(%arg0: i32) -> (i32, i32) {
    %c0_i32 = arith.constant 0 : i32
    %c0_i32_0 = arith.constant 0 : i32
    %c0_i32_1 = arith.constant 0 : i32
    return %c0_i32, %c0_i32_0 : i32, i32
  }
  func.func @transform_5(%arg0: i32) -> (i32, i32, i32) {
    %c0_i32 = arith.constant 0 : i32
    %c0_i32_0 = arith.constant 0 : i32
    %c0_i32_1 = arith.constant 0 : i32
    return %arg0, %c0_i32, %c0_i32_0 : i32, i32, i32
  }
}

</mosaic_0001>

<bundles_post_ra>
// kernel: tpu_custom_call.1
= control target key start
LH: loop header
LB: loop body
LE: loop exit
PB: predicated region body
PF: predicated region fallthrough
CT: control target
= control target key end

     0   :  { %10 = vsyncpa [#allocation3], 0  ;;  %s2635_s0 = inlined_call_operand.vmem [shape: f32[2,8,32], index: 0, kind: input, shape index: {}]   ;;  %s2636_s1 = inlined_call_operand.vmem [shape: f32[3,8,32,4], index: 1, kind: input, shape index: {}]   ;;  %s2637_s2 = inlined_call_operand.vmem [shape: f32[3,8,1,4], index: 2, kind: input, shape index: {}]   ;;  %s2638_s3 = inlined_call_operand.vmem [shape: f32[8,4,32], index: 3, kind: input, shape index: {}]   ;;  %s2639_s4 = inlined_call_operand.vmem [shape: f32[1,32], index: 4, kind: input, shape index: {}]   ;;  %s2640_s5 = inlined_call_operand.hbm [shape: f32[2,8,32], index: 5, kind: output, shape index: {}]  }
   0x1   :  { %12 = vsyncpa [#allocation3 + $0x1], 0  ;;  %s2048_s18 = smov 0   ;;  %s2050_s19 = smov 0  }
   0x2   :  { %s2052_s20 = smov 0   ;;  %s2054_s21 = smov 0  }
   0x3 LB: > { %s2069_s22 = sadd.s32 4294967295, %s2016_s21   ;;  %s1704_s23 = sadd.s32 4294967294, %s2016_s21   ;;  %s2016_s21 = sphi %s2054_s21, %s2646_s21   ;;  %s2012_s20 = sphi %s2052_s20, %s2645_s20   ;;  %s2008_s19 = sphi %s2050_s19, %s2644_s19   ;;  %s2004_s18 = sphi %s2048_s18, %s2643_s18  }
   0x4   : > { %s2073_s24 = sadd.s32 1, %s2016_s21   ;;  %s135_s25 = sadd.s32 1, %s2012_s20 }
   0x5   : > { %s132_s26 = ssub.s32 %s2016_s21, %s2073_s24  ;;  %p145_p0 = scmp.ne.s32.totalorder %s2012_s20, %s2008_s19 }
   0x6   : > { %p133_p1 = scmp.eq.s32.totalorder %s132_s26, 0  ;;  %p146_p2 = scmp.eq.s32.totalorder %s2069_s22, 1 }
   0x7   : > { %p151_p3 = scmp.ne.s32.totalorder %s2008_s19, %s2004_s18  ;;  %p152_p4 = scmp.eq.s32.totalorder %s1704_s23, 1 }
   0x8   : > { %s2084_s27 = scalar_select %p133_p1, %s2012_s20, %s135_s25  }
   0x9   : > { %p2086_p5 = por %p146_p2, %p145_p0  ;;  %p2090_p6 = por %p152_p4, %p151_p3 }
   0xa   : > { %p1707_p7 = scmp.ge.s32.totalorder %s2016_s21, 1  ;;  %p189_p8 = scmp.lt.s32.totalorder %s2016_s21, 3 }
   0xc   : > { %p190_p9 = pnand %p1707_p7, %p189_p8 }
   0xd   : > { %p216_p10 = scmp.lt.s32.totalorder (!%p190_p9), %s2069_s22, 1  ;;  %s1855_s12 = sshll.u32 (!%p190_p9), %s2069_s22, 3 }
   0xe   : > { %193 = sbr.rel (%p190_p9) target bundleno = 863 (0x35f), region = 40  ;;  %s1640_s15 = scalar_lea.hbm (!%p190_p9), %s2640_s5, %s1855_s12 }
   0xf   : > { %s1644_s25 = sshll.u32 (!%p190_p9), %s1640_s15, 4  ;;  %s1645_s25 = int_to_ptr.hbm [resolvable:$true] %s1644_s25 }
  0x10   : > { %s1968_s30 = sshra.s32 (!%p190_p9), %s1645_s25, 4  ;;  %s1969_s30 = int_to_ptr.hbm [resolvable:$true] %s1968_s30 }
  0x11   : > { %s1970_s6 = scalar_lea.hbm (!%p190_p9), %s1969_s30, 8  ;;  %p1975_p0 = scmp.lt.s32.totalorder (!%p190_p9), %s1969_s30, %s2640_s5 }
  0x12   : > { %p1971_p11 = scmp.ne.s32.totalorder (!%p190_p9), %s1969_s30, %s1970_s6 }
  0x13   : > { %v224_v0 = vld [vmem:[%s2636_s1 + $0x18] sm:$0xff]  ;;  %v223_v4 = vld [vmem:[%s2636_s1 + $0x10] sm:$0xff]  ;;  %v222_v8 = vld [vmem:[%s2636_s1 + $0x8] sm:$0xff]  ;;  %s217_s7 = scalar_select %p216_p10, %s2069_s22, 1  ;;  %vm285_vm0 = vcmask 261120   ;;  %vm901_vm1 = vcmask 31744  }
  0x14   : > { %v228_v1 = vld [vmem:[%s2636_s1 + $0x38] sm:$0xff]  ;;  %301 = vmatpush.msra.mxu0 %v224_v0  ;;  %v227_v5 = vld [vmem:[%s2636_s1 + $0x30] sm:$0xff]  ;;  %v226_v9 = vld [vmem:[%s2636_s1 + $0x28] sm:$0xff]  ;;  %vm1110_vm2 = vcmask 64512   ;;  %vm1402_vm3 = vcmask 1043456   ;;  %p1972_p12 = pnand %p1971_p11, %p2086_p5 }
  0x15   : > { %v232_v2 = vld [vmem:[%s2636_s1 + $0x58] sm:$0xff]  ;;  %321 = vmatpush.msra.mxu1 %v228_v1  ;;  %v231_v6 = vld [vmem:[%s2636_s1 + $0x50] sm:$0xff]  ;;  %v230_v10 = vld [vmem:[%s2636_s1 + $0x48] sm:$0xff]  ;;  %s1709_s23 = sshll.u32 %s217_s7, 3  ;;  %s213_s7 = sand.u32 1, %s2008_s19  }
  0x16   : > { %v236_v3 = vld [vmem:[%s2636_s1 + $0x78] sm:$0xff]  ;;  %341 = vmatpush.msra.mxu2 %v232_v2  ;;  %v235_v7 = vld [vmem:[%s2636_s1 + $0x70] sm:$0xff]  ;;  %302 = vmatpush.msra.mxu0 %v223_v4  ;;  %v234_v11 = vld [vmem:[%s2636_s1 + $0x68] sm:$0xff]  ;;  %s219_s10 = scalar_lea.vmem %s2635_s0, %s1709_s23  ;;  %s1708_s11 = sshll.u32 %s213_s7, 3 }
  0x17   : > { %361 = vmatpush.msra.mxu3 %v236_v3  ;;  %322 = vmatpush.msra.mxu1 %v227_v5  ;;  %v221_v12 = vld [vmem:[%s2636_s1] sm:$0xff]  ;;  %v240_v17 = vld [vmem:[%s2636_s1 + $0x98] sm:$0xff]  ;;  %v239_v21 = vld [vmem:[%s2636_s1 + $0x90] sm:$0xff]  ;;  %s215_s22 = scalar_lea.vmem [#allocation2], %s1708_s11  ;;  %s1630_s26 = scalar_lea.sflag [#allocation3], %s213_s7 }
  0x18   : > { %342 = vmatpush.msra.mxu2 %v231_v6  ;;  %v225_v13 = vld [vmem:[%s2636_s1 + $0x20] sm:$0xff]  ;;  %303 = vmatpush.msra.mxu0 %v222_v8  ;;  %v244_v18 = vld [vmem:[%s2636_s1 + $0xb8] sm:$0xff]  ;;  %v243_v22 = vld [vmem:[%s2636_s1 + $0xb0] sm:$0xff]  ;;  %s1642_s23 = sshll.u32 %s215_s22, 4  ;;  %p1973_p13 = pneg %p1972_p12  ;;  %s1643_s23 = int_to_ptr.vmem [resolvable:$true] %s1642_s23 }
  0x19   : > { %362 = vmatpush.msra.mxu3 %v235_v7  ;;  %323 = vmatpush.msra.mxu1 %v226_v9  ;;  %v229_v14 = vld [vmem:[%s2636_s1 + $0x40] sm:$0xff]  ;;  %v248_v19 = vld [vmem:[%s2636_s1 + $0xd8] sm:$0xff]  ;;  %v247_v23 = vld [vmem:[%s2636_s1 + $0xd0] sm:$0xff] }
  0x1a   : > { %v233_v15 = vld [vmem:[%s2636_s1 + $0x60] sm:$0xff]  ;;  %343 = vmatpush.msra.mxu2 %v230_v10  ;;  %304 = vmatpush.msra.mxu0 %v221_v12  ;;  %v252_v20 = vld [vmem:[%s2636_s1 + $0xf8] sm:$0xff]  ;;  %v251_v24 = vld [vmem:[%s2636_s1 + $0xf0] sm:$0xff] }
  0x1b   : > { %363 = vmatpush.msra.mxu3 %v234_v11  ;;  %v2149_v16 = vld [vmem:[%s219_s10] sm:$0xff]  ;;  %324 = vmatpush.msra.mxu1 %v225_v13  ;;  %v238_v25 = vld [vmem:[%s2636_s1 + $0x88] sm:$0xff]  ;;  %v1721_v33 = vld [vmem:[%s2636_s1 + $0x118] sm:$0xff]  ;;  %s1974_s10 = scalar_lea.hbm %s2640_s5, 16 }
  0x1c   : > { %344 = vmatpush.msra.mxu2 %v229_v14  ;;  %1710 = vmatmul.msk.f32.vlgmr.msra.gmra.mxu0 %vm285_vm0, %v2149_v16  ;;  %v242_v26 = vld [vmem:[%s2636_s1 + $0xa8] sm:$0xff]  ;;  %v237_v29 = vld [vmem:[%s2636_s1 + $0x80] sm:$0xff]  ;;  %v1725_v34 = vld [vmem:[%s2636_s1 + $0x138] sm:$0xff]  ;;  %p1976_p1 = scmp.lt.s32.totalorder %s1974_s10, %s1970_s6 }
  0x1d   : > { %364 = vmatpush.msra.mxu3 %v233_v15  ;;  %1711 = vmatmul.msk.f32.vlgmr.msra.gmra.mxu1 %vm285_vm0, %v2149_v16  ;;  %v246_v27 = vld [vmem:[%s2636_s1 + $0xc8] sm:$0xff]  ;;  %v241_v30 = vld [vmem:[%s2636_s1 + $0xa0] sm:$0xff]  ;;  %v1729_v35 = vld [vmem:[%s2636_s1 + $0x158] sm:$0xff] }
  0x1e   : > { %1712 = vmatmul.msk.f32.vlgmr.msra.gmra.mxu2 %vm285_vm0, %v2149_v16  ;;  %1713 = vmatmul.msk.f32.vlgmr.msra.gmra.mxu3 %vm285_vm0, %v2149_v16  ;;  %v250_v28 = vld [vmem:[%s2636_s1 + $0xe8] sm:$0xff]  ;;  %v245_v31 = vld [vmem:[%s2636_s1 + $0xc0] sm:$0xff]  ;;  %v1733_v36 = vld [vmem:[%s2636_s1 + $0x178] sm:$0xff]  ;;  %p1977_p2 = por %p1976_p1, %p1975_p0 }
  0x1f   : > { %381 = vmatpush.msrb.mxu0 %v240_v17  ;;  %401 = vmatpush.msrb.mxu1 %v244_v18  ;;  %v249_v32 = vld [vmem:[%s2636_s1 + $0xe0] sm:$0xff]  ;;  %v1720_v37 = vld [vmem:[%s2636_s1 + $0x110] sm:$0xff]  ;;  %v1719_v41 = vld [vmem:[%s2636_s1 + $0x108] sm:$0xff] }
  0x20   : > { %421 = vmatpush.msrb.mxu2 %v248_v19  ;;  %441 = vmatpush.msrb.mxu3 %v252_v20  ;;  %v1724_v38 = vld [vmem:[%s2636_s1 + $0x130] sm:$0xff]  ;;  %v1723_v42 = vld [vmem:[%s2636_s1 + $0x128] sm:$0xff]  ;;  %v1718_v45 = vld [vmem:[%s2636_s1 + $0x100] sm:$0xff]  ;;  %p1978_p3 = pnand %p1977_p2, %p1973_p13 }
  0x21   : > { %382 = vmatpush.msrb.mxu0 %v239_v21  ;;  %402 = vmatpush.msrb.mxu1 %v243_v22  ;;  %v1728_v39 = vld [vmem:[%s2636_s1 + $0x150] sm:$0xff]  ;;  %v1727_v43 = vld [vmem:[%s2636_s1 + $0x148] sm:$0xff]  ;;  %v1722_v46 = vld [vmem:[%s2636_s1 + $0x120] sm:$0xff] }
  0x22   : > { %422 = vmatpush.msrb.mxu2 %v247_v23  ;;  %442 = vmatpush.msrb.mxu3 %v251_v24  ;;  %v1732_v40 = vld [vmem:[%s2636_s1 + $0x170] sm:$0xff]  ;;  %v1731_v44 = vld [vmem:[%s2636_s1 + $0x168] sm:$0xff]  ;;  %v1726_v47 = vld [vmem:[%s2636_s1 + $0x140] sm:$0xff] }
  0x23   : > { %383 = vmatpush.msrb.mxu0 %v238_v25  ;;  %403 = vmatpush.msrb.mxu1 %v242_v26  ;;  %v1730_v48 = vld [vmem:[%s2636_s1 + $0x160] sm:$0xff]  ;;  %v1737_v49 = vld [vmem:[%s2636_s1 + $0x198] sm:$0xff]  ;;  %v1736_v53 = vld [vmem:[%s2636_s1 + $0x190] sm:$0xff] }
  0x24   : > { %423 = vmatpush.msrb.mxu2 %v246_v27  ;;  %443 = vmatpush.msrb.mxu3 %v250_v28  ;;  %v1745_v50 = vld [vmem:[%s2636_s1 + $0x1d8] sm:$0xff]  ;;  %v1744_v54 = vld [vmem:[%s2636_s1 + $0x1d0] sm:$0xff]  ;;  %v1735_v57 = vld [vmem:[%s2636_s1 + $0x188] sm:$0xff] }
  0x25   : > { %384 = vmatpush.msrb.mxu0 %v237_v29  ;;  %404 = vmatpush.msrb.mxu1 %v241_v30  ;;  %v1749_v51 = vld [vmem:[%s2636_s1 + $0x1f8] sm:$0xff]  ;;  %v1748_v55 = vld [vmem:[%s2636_s1 + $0x1f0] sm:$0xff]  ;;  %v1743_v58 = vld [vmem:[%s2636_s1 + $0x1c8] sm:$0xff] }
  0x26   : > { %424 = vmatpush.msrb.mxu2 %v245_v31  ;;  %444 = vmatpush.msrb.mxu3 %v249_v32  ;;  %v1741_v52 = vld [vmem:[%s2636_s1 + $0x1b8] sm:$0xff]  ;;  %v1740_v56 = vld [vmem:[%s2636_s1 + $0x1b0] sm:$0xff]  ;;  %v1747_v59 = vld [vmem:[%s2636_s1 + $0x1e8] sm:$0xff] }
  0x27   : > { %1714 = vmatmul.msk.f32.vlgmr.msrb.gmra.mxu0 %vm285_vm0, %v2149_v16  ;;  %1715 = vmatmul.msk.f32.vlgmr.msrb.gmra.mxu1 %vm285_vm0, %v2149_v16  ;;  %v1739_v60 = vld [vmem:[%s2636_s1 + $0x1a8] sm:$0xff]  ;;  %v1734_v61 = vld [vmem:[%s2636_s1 + $0x180] sm:$0xff]  ;;  %v1769_v1 = vld [vmem:[%s2636_s1 + $0x218] sm:$0xff] }
  0x28   : > { %1716 = vmatmul.msk.f32.vlgmr.msrb.gmra.mxu2 %vm285_vm0, %v2149_v16  ;;  %1717 = vmatmul.msk.f32.vlgmr.msrb.gmra.mxu3 %vm285_vm0, %v2149_v16  ;;  %v1742_v62 = vld [vmem:[%s2636_s1 + $0x1c0] sm:$0xff]  ;;  %v1773_v2 = vld [vmem:[%s2636_s1 + $0x238] sm:$0xff]  ;;  %v1768_v3 = vld [vmem:[%s2636_s1 + $0x210] sm:$0xff] }
  0x29   : > { %527 = vmatpush.msra.mxu0 %v1721_v33  ;;  %547 = vmatpush.msra.mxu1 %v1725_v34  ;;  %v1746_v63 = vld [vmem:[%s2636_s1 + $0x1e0] sm:$0xff]  ;;  %v1772_v4 = vld [vmem:[%s2636_s1 + $0x230] sm:$0xff]  ;;  %v1767_v5 = vld [vmem:[%s2636_s1 + $0x208] sm:$0xff] }
  0x2a   : > { %567 = vmatpush.msra.mxu2 %v1729_v35  ;;  %587 = vmatpush.msra.mxu3 %v1733_v36  ;;  %v1738_v0 = vld [vmem:[%s2636_s1 + $0x1a0] sm:$0xff]  ;;  %v1771_v6 = vld [vmem:[%s2636_s1 + $0x228] sm:$0xff]  ;;  %v1777_v9 = vld [vmem:[%s2636_s1 + $0x258] sm:$0xff] }
  0x2b   : > { %528 = vmatpush.msra.mxu0 %v1720_v37  ;;  %548 = vmatpush.msra.mxu1 %v1724_v38  ;;  %v1766_v7 = vld [vmem:[%s2636_s1 + $0x200] sm:$0xff]  ;;  %v1781_v10 = vld [vmem:[%s2636_s1 + $0x278] sm:$0xff]  ;;  %v1776_v11 = vld [vmem:[%s2636_s1 + $0x250] sm:$0xff] }
  0x2c   : > { %568 = vmatpush.msra.mxu2 %v1728_v39  ;;  %588 = vmatpush.msra.mxu3 %v1732_v40  ;;  %v1770_v8 = vld [vmem:[%s2636_s1 + $0x220] sm:$0xff]  ;;  %v1780_v12 = vld [vmem:[%s2636_s1 + $0x270] sm:$0xff]  ;;  %v1785_v13 = vld [vmem:[%s2636_s1 + $0x298] sm:$0xff] }
  0x2d   : > { %529 = vmatpush.msra.mxu0 %v1719_v41  ;;  %549 = vmatpush.msra.mxu1 %v1723_v42  ;;  %v1789_v14 = vld [vmem:[%s2636_s1 + $0x2b8] sm:$0xff]  ;;  %v1775_v15 = vld [vmem:[%s2636_s1 + $0x248] sm:$0xff]  ;;  %v1784_v18 = vld [vmem:[%s2636_s1 + $0x290] sm:$0xff] }
  0x2e   : > { %569 = vmatpush.msra.mxu2 %v1727_v43  ;;  %589 = vmatpush.msra.mxu3 %v1731_v44  ;;  %v1779_v17 = vld [vmem:[%s2636_s1 + $0x268] sm:$0xff]  ;;  %v1788_v19 = vld [vmem:[%s2636_s1 + $0x2b0] sm:$0xff]  ;;  %v1774_v20 = vld [vmem:[%s2636_s1 + $0x240] sm:$0xff] }
  0x2f   : > { %530 = vmatpush.msra.mxu0 %v1718_v45  ;;  %550 = vmatpush.msra.mxu1 %v1722_v46  ;;  %v1778_v21 = vld [vmem:[%s2636_s1 + $0x260] sm:$0xff]  ;;  %v1783_v22 = vld [vmem:[%s2636_s1 + $0x288] sm:$0xff]  ;;  %v1793_v26 = vld [vmem:[%s2636_s1 + $0x2d8] sm:$0xff] }
  0x30   : > { %570 = vmatpush.msra.mxu2 %v1726_v47  ;;  %590 = vmatpush.msra.mxu3 %v1730_v48  ;;  %v1787_v23 = vld [vmem:[%s2636_s1 + $0x2a8] sm:$0xff]  ;;  %v1782_v24 = vld [vmem:[%s2636_s1 + $0x280] sm:$0xff]  ;;  %v1797_v27 = vld [vmem:[%s2636_s1 + $0x2f8] sm:$0xff] }
  0x31   : > { %1758 = vmatmul.msk.f32.vlgmr.msra.gmra.mxu0 %vm285_vm0, %v2149_v16  ;;  %1759 = vmatmul.msk.f32.vlgmr.msra.gmra.mxu1 %vm285_vm0, %v2149_v16  ;;  %v1786_v25 = vld [vmem:[%s2636_s1 + $0x2a0] sm:$0xff]  ;;  %v1792_v28 = vld [vmem:[%s2636_s1 + $0x2d0] sm:$0xff]  ;;  %v1791_v30 = vld [vmem:[%s2636_s1 + $0x2c8] sm:$0xff] }
  0x32   : > { %1760 = vmatmul.msk.f32.vlgmr.msra.gmra.mxu2 %vm285_vm0, %v2149_v16  ;;  %1761 = vmatmul.msk.f32.vlgmr.msra.gmra.mxu3 %vm285_vm0, %v2149_v16  ;;  %v1796_v29 = vld [vmem:[%s2636_s1 + $0x2f0] sm:$0xff]  ;;  %v1795_v31 = vld [vmem:[%s2636_s1 + $0x2e8] sm:$0xff]  ;;  %v1790_v32 = vld [vmem:[%s2636_s1 + $0x2c0] sm:$0xff] }
  0x33   : > { %607 = vmatpush.msrb.mxu0 %v1737_v49  ;;  %647 = vmatpush.msrb.mxu2 %v1745_v50  ;;  %v1794_v33 = vld [vmem:[%s2636_s1 + $0x2e0] sm:$0xff]  ;;  %v1905_v42 = vld [vmem:[%s2637_s2 + $0x8] ss:$0 sm:$0xff]  ;;  %v1906_v43 = vld [vmem:[%s2637_s2 + $0x9] ss:$0 sm:$0xff] }
  0x34   : > { %667 = vmatpush.msrb.mxu3 %v1749_v51  ;;  %627 = vmatpush.msrb.mxu1 %v1741_v52  ;;  %v1898_v44 = vld [vmem:[%s2637_s2 + $0x1] ss:$0 sm:$0xff]  ;;  %v1907_v51 = vld [vmem:[%s2637_s2 + $0xa] ss:$0 sm:$0xff]  ;;  %v1908_v52 = vld [vmem:[%s2637_s2 + $0xb] ss:$0 sm:$0xff] }
  0x35   : > { %608 = vmatpush.msrb.mxu0 %v1736_v53  ;;  %648 = vmatpush.msrb.mxu2 %v1744_v54  ;;  %v1909_v53 = vld [vmem:[%s2637_s2 + $0xc] ss:$0 sm:$0xff]  ;;  %v1899_v54 = vld [vmem:[%s2637_s2 + $0x2] ss:$0 sm:$0xff] }
  0x36   : > { %668 = vmatpush.msrb.mxu3 %v1748_v55  ;;  %628 = vmatpush.msrb.mxu1 %v1740_v56  ;;  %v1900_v55 = vld [vmem:[%s2637_s2 + $0x3] ss:$0 sm:$0xff]  ;;  %v1901_v56 = vld [vmem:[%s2637_s2 + $0x4] ss:$0 sm:$0xff] }
  0x37   : > { %609 = vmatpush.msrb.mxu0 %v1735_v57  ;;  %649 = vmatpush.msrb.mxu2 %v1743_v58 }
  0x38   : > { %669 = vmatpush.msrb.mxu3 %v1747_v59  ;;  %629 = vmatpush.msrb.mxu1 %v1739_v60 }
  0x39   : > { %610 = vmatpush.msrb.mxu0 %v1734_v61  ;;  %650 = vmatpush.msrb.mxu2 %v1742_v62  ;;  %v1910_v61 = vld [vmem:[%s2637_s2 + $0xd] ss:$0 sm:$0xff]  ;;  %v1902_v62 = vld [vmem:[%s2637_s2 + $0x5] ss:$0 sm:$0xff] }
  0x3a   : > { %670 = vmatpush.msrb.mxu3 %v1746_v63  ;;  %1762 = vmatmul.msk.f32.vlgmr.msrb.gmra.mxu0 %vm285_vm0, %v2149_v16 }
  0x3b   : > { %630 = vmatpush.msrb.mxu1 %v1738_v0  ;;  %1764 = vmatmul.msk.f32.vlgmr.msrb.gmra.mxu2 %vm285_vm0, %v2149_v16 }
  0x3c   : > { %1765 = vmatmul.msk.f32.vlgmr.msrb.gmra.mxu3 %vm285_vm0, %v2149_v16  ;;  %1763 = vmatmul.msk.f32.vlgmr.msrb.gmra.mxu1 %vm285_vm0, %v2149_v16 }
  0x3d   : > { %753 = vmatpush.msra.mxu0 %v1769_v1  ;;  %773 = vmatpush.msra.mxu1 %v1773_v2 }
  0x3e   : > { %793 = vmatpush.msra.mxu2 %v1777_v9  ;;  %813 = vmatpush.msra.mxu3 %v1781_v10  ;;  %v1903_v9 = vld [vmem:[%s2637_s2 + $0x6] ss:$0 sm:$0xff] }
  0x3f   : > { %754 = vmatpush.msra.mxu0 %v1768_v3  ;;  %774 = vmatpush.msra.mxu1 %v1772_v4 }
  0x40   : > { %794 = vmatpush.msra.mxu2 %v1776_v11  ;;  %814 = vmatpush.msra.mxu3 %v1780_v12  ;;  %v1904_v11 = vld [vmem:[%s2637_s2 + $0x7] ss:$0 sm:$0xff] }
  0x41   : > { %755 = vmatpush.msra.mxu0 %v1767_v5  ;;  %775 = vmatpush.msra.mxu1 %v1771_v6 }
  0x42   : > { %795 = vmatpush.msra.mxu2 %v1775_v15  ;;  %815 = vmatpush.msra.mxu3 %v1779_v17 }
  0x43   : > { %756 = vmatpush.msra.mxu0 %v1766_v7  ;;  %776 = vmatpush.msra.mxu1 %v1770_v8  ;;  %v1911_v7 = vld [vmem:[%s2637_s2 + $0xe] ss:$0 sm:$0xff]  ;;  %v1912_v8 = vld [vmem:[%s2637_s2 + $0xf] ss:$0 sm:$0xff] }
  0x44   : > { %1806 = vmatmul.msk.f32.vlgmr.msra.gmra.mxu0 %vm285_vm0, %v2149_v16  ;;  %1807 = vmatmul.msk.f32.vlgmr.msra.gmra.mxu1 %vm285_vm0, %v2149_v16 }
  0x45   : > { %833 = vmatpush.msrb.mxu0 %v1785_v13  ;;  %853 = vmatpush.msrb.mxu1 %v1789_v14 }
  0x46   : > { %796 = vmatpush.msra.mxu2 %v1774_v20  ;;  %816 = vmatpush.msra.mxu3 %v1778_v21 }
  0x47   : > { %834 = vmatpush.msrb.mxu0 %v1784_v18  ;;  %854 = vmatpush.msrb.mxu1 %v1788_v19  ;;  %v1913_v18 = vld [vmem:[%s2637_s2 + $0x10] ss:$0 sm:$0xff]  ;;  %v1914_v19 = vld [vmem:[%s2637_s2 + $0x11] ss:$0 sm:$0xff] }
  0x48   : > { %1808 = vmatmul.msk.f32.vlgmr.msra.gmra.mxu2 %vm285_vm0, %v2149_v16  ;;  %1809 = vmatmul.msk.f32.vlgmr.msra.gmra.mxu3 %vm285_vm0, %v2149_v16 }
  0x49   : > { %835 = vmatpush.msrb.mxu0 %v1783_v22  ;;  %855 = vmatpush.msrb.mxu1 %v1787_v23 }
  0x4a   : > { %873 = vmatpush.msrb.mxu2 %v1793_v26  ;;  %893 = vmatpush.msrb.mxu3 %v1797_v27 }
  0x4b   : > { %836 = vmatpush.msrb.mxu0 %v1782_v24  ;;  %856 = vmatpush.msrb.mxu1 %v1786_v25  ;;  %v1915_v24 = vld [vmem:[%s2637_s2 + $0x14] ss:$0 sm:$0xff]  ;;  %v1916_v25 = vld [vmem:[%s2637_s2 + $0x15] ss:$0 sm:$0xff] }
  0x4c   : > { %1810 = vmatmul.msk.f32.vlgmr.msrb.gmra.mxu0 %vm285_vm0, %v2149_v16  ;;  %1811 = vmatmul.msk.f32.vlgmr.msrb.gmra.mxu1 %vm285_vm0, %v2149_v16 }
  0x4d   : > { %874 = vmatpush.msrb.mxu2 %v1792_v28  ;;  %894 = vmatpush.msrb.mxu3 %v1796_v29  ;;  %v1917_v28 = vld [vmem:[%s2637_s2 + $0x12] ss:$0 sm:$0xff]  ;;  %v1918_v29 = vld [vmem:[%s2637_s2 + $0x13] ss:$0 sm:$0xff] }
  0x4f   : > { %875 = vmatpush.msrb.mxu2 %v1791_v30  ;;  %895 = vmatpush.msrb.mxu3 %v1795_v31 }
  0x51   : > { %876 = vmatpush.msrb.mxu2 %v1790_v32  ;;  %896 = vmatpush.msrb.mxu3 %v1794_v33 }
  0x52   : > { %1812 = vmatmul.msk.f32.vlgmr.msrb.gmra.mxu2 %vm285_vm0, %v2149_v16  ;;  %1813 = vmatmul.msk.f32.vlgmr.msrb.gmra.mxu3 %vm285_vm0, %v2149_v16  ;;  %v1897_v16 = vld [vmem:[%s2637_s2] ss:$0 sm:$0xff] }
  0x99   : > { %v306_v34 = vpop.f32.mrf.mxu0 }
  0x9a   : > { %v326_v35 = vpop.f32.mrf.mxu1  ;;  %v307_v49 = vadd.f32 %v1897_v16, %v306_v34 }
  0x9b   : > { %v327_v50 = vadd.f32 %v1898_v44, %v326_v35 }
  0xa1   : > { %v346_v36 = vpop.f32.mrf.mxu2  ;;  %v366_v37 = vpop.f32.mrf.mxu3 }
  0xa2   : > { %v347_v1 = vadd.f32 %v1899_v54, %v346_v36  ;;  %v367_v2 = vadd.f32 %v1900_v55, %v366_v37  ;;  %v1919_v36 = vld [vmem:[%s2637_s2 + $0x16] ss:$0 sm:$0xff]  ;;  %v1920_v37 = vld [vmem:[%s2637_s2 + $0x17] ss:$0 sm:$0xff] }
  0xa4   : > { %v386_v38 = vpop.f32.mrf.mxu0  ;;  %v406_v39 = vpop.f32.mrf.mxu1 }
  0xa5   : > { %v387_v3 = vadd.f32 %v1901_v56, %v386_v38  ;;  %v407_v6 = vadd.f32 %v1902_v62, %v406_v39 }
  0xab   : > { %v426_v40 = vpop.f32.mrf.mxu2  ;;  %v446_v41 = vpop.f32.mrf.mxu3 }
  0xac   : > { %v427_v15 = vadd.f32 %v1903_v9, %v426_v40  ;;  %v447_v17 = vadd.f32 %v1904_v11, %v446_v41 }
  0xae   : > { %v532_v45 = vpop.f32.mrf.mxu0  ;;  %v552_v46 = vpop.f32.mrf.mxu1 }
  0xaf   : > { %v533_v47 = vadd.f32 %v1905_v42, %v532_v45  ;;  %v553_v48 = vadd.f32 %v1906_v43, %v552_v46 }
  0xb1   : > { %1814 = vmatpush.xpose.msk.msra.mxu0 %vm901_vm1, %v533_v47  ;;  %1816 = vmatpush.xpose.msk.msra.mxu1 %vm901_vm1, %v553_v48 }
  0xb4   : > { %1815 = vmatmul.msk.f32.vlgmr.msra.gmra.mxu0 %vm901_vm1, %v307_v49  ;;  %1817 = vmatmul.msk.f32.vlgmr.msra.gmra.mxu1 %vm901_vm1, %v327_v50 }
  0xb5   : > { %v572_v57 = vpop.f32.mrf.mxu2  ;;  %v592_v58 = vpop.f32.mrf.mxu3 }
  0xb6   : > { %v573_v59 = vadd.f32 %v1907_v51, %v572_v57  ;;  %v593_v60 = vadd.f32 %v1908_v52, %v592_v58 }
  0xb7   : > { %v612_v63 = vpop.f32.mrf.mxu0 }
  0xb8   : > { %v613_v0 = vadd.f32 %v1909_v53, %v612_v63  ;;  %1818 = vmatpush.xpose.msk.msra.mxu2 %vm901_vm1, %v573_v59  ;;  %1820 = vmatpush.xpose.msk.msra.mxu3 %vm901_vm1, %v593_v60 }
  0xb9   : > { %v632_v4 = vpop.f32.mrf.mxu1 }
  0xba   : > { %v633_v5 = vadd.f32 %v1910_v61, %v632_v4  ;;  %1822 = vmatpush.xpose.msk.msrb.mxu0 %vm901_vm1, %v613_v0 }
  0xbb   : > { %1819 = vmatmul.msk.f32.vlgmr.msra.gmra.mxu2 %vm901_vm1, %v347_v1  ;;  %1821 = vmatmul.msk.f32.vlgmr.msra.gmra.mxu3 %vm901_vm1, %v367_v2 }
  0xbc   : > { %1824 = vmatpush.xpose.msk.msrb.mxu1 %vm901_vm1, %v633_v5 }
  0xbd   : > { %1823 = vmatmul.msk.f32.vlgmr.msrb.gmra.mxu0 %vm901_vm1, %v387_v3 }
  0xbe   : > { %v652_v10 = vpop.f32.mrf.mxu2 }
  0xbf   : > { %v653_v12 = vadd.f32 %v1911_v7, %v652_v10  ;;  %v672_v13 = vpop.f32.mrf.mxu3  ;;  %1825 = vmatmul.msk.f32.vlgmr.msrb.gmra.mxu1 %vm901_vm1, %v407_v6 }
  0xc0   : > { %v673_v14 = vadd.f32 %v1912_v8, %v672_v13 }
  0xc1   : > { %1826 = vmatpush.xpose.msk.msrb.mxu2 %vm901_vm1, %v653_v12  ;;  %v758_v20 = vpop.f32.mrf.mxu0  ;;  %v778_v21 = vpop.f32.mrf.mxu1 }
  0xc2   : > { %1828 = vmatpush.xpose.msk.msrb.mxu3 %vm901_vm1, %v673_v14  ;;  %v759_v22 = vadd.f32 %v1913_v18, %v758_v20  ;;  %v779_v23 = vadd.f32 %v1914_v19, %v778_v21 }
  0xc4   : > { %1827 = vmatmul.msk.f32.vlgmr.msrb.gmra.mxu2 %vm901_vm1, %v427_v15  ;;  %1225 = vmatpush.msra.mxu0 %v759_v22 }
  0xc5   : > { %1829 = vmatmul.msk.f32.vlgmr.msrb.gmra.mxu3 %vm901_vm1, %v447_v17  ;;  %1248 = vmatpush.msra.mxu1 %v779_v23 }
  0xc9   : > { %v838_v26 = vpop.f32.mrf.mxu0  ;;  %v858_v27 = vpop.f32.mrf.mxu1 }
  0xca   : > { %v839_v30 = vadd.f32 %v1915_v24, %v838_v26  ;;  %v859_v31 = vadd.f32 %v1916_v25, %v858_v27 }
  0xcb   : > { %v798_v32 = vpop.f32.mrf.mxu2  ;;  %v818_v33 = vpop.f32.mrf.mxu3 }
  0xcc   : > { %1317 = vmatpush.msrb.mxu0 %v839_v30  ;;  %1340 = vmatpush.msrb.mxu1 %v859_v31  ;;  %v799_v34 = vadd.f32 %v1917_v28, %v798_v32  ;;  %v819_v35 = vadd.f32 %v1918_v29, %v818_v33 }
  0xce   : > { %1271 = vmatpush.msra.mxu2 %v799_v34  ;;  %1294 = vmatpush.msra.mxu3 %v819_v35 }
  0xd5   : > { %v878_v38 = vpop.f32.mrf.mxu2  ;;  %v898_v39 = vpop.f32.mrf.mxu3 }
  0xd6   : > { %v879_v40 = vadd.f32 %v1919_v36, %v878_v38  ;;  %v899_v41 = vadd.f32 %v1920_v37, %v898_v39 }
  0xd8   : > { %1363 = vmatpush.msrb.mxu2 %v879_v40  ;;  %1386 = vmatpush.msrb.mxu3 %v899_v41 }
 0x131   : > { %v925_v42 = vpop.f32.mrf.mxu0  ;;  %v951_v43 = vpop.f32.mrf.mxu1 }
 0x132   : > { %v1114_v16 = vsel %vm1110_vm2, %v951_v43, -inf  ;;  %v1111_v44 = vsel %vm1110_vm2, %v925_v42, -inf }
 0x133   : > { %1115 = vmax.xlane.f32.xlu2 %v1114_v16  ;;  %1112 = vmax.xlane.f32.xlu1 %v1111_v44 }
 0x13a   : > { %v1029_v53 = vpop.f32.mrf.mxu0 }
 0x13b   : > { %v1123_v55 = vsel %vm1110_vm2, %v1029_v53, -inf }
 0x13c   : > { %v1055_v54 = vpop.f32.mrf.mxu1 }
 0x13d   : > { %v1126_v56 = vsel %vm1110_vm2, %v1055_v54, -inf }
 0x13e   : > { %v977_v45 = vpop.f32.mrf.mxu2  ;;  %v1003_v46 = vpop.f32.mrf.mxu3 }
 0x13f   : > { %v1117_v47 = vsel %vm1110_vm2, %v977_v45, -inf  ;;  %v1120_v49 = vsel %vm1110_vm2, %v1003_v46, -inf }
 0x140   : > { %1118 = vmax.xlane.f32.xlu0 %v1117_v47 }
 0x147   : > { %v1081_v48 = vpop.f32.mrf.mxu2 }
 0x148   : > { %v1107_v50 = vpop.f32.mrf.mxu3  ;;  %1121 = vmax.xlane.f32.xlu0 %v1120_v49  ;;  %v1129_v51 = vsel %vm1110_vm2, %v1081_v48, -inf }
 0x149   : > { %v1132_v52 = vsel %vm1110_vm2, %v1107_v50, -inf  ;;  %1130 = vmax.xlane.f32.xlu1 %v1129_v51 }
 0x14a   : > { %1133 = vmax.xlane.f32.xlu2 %v1132_v52 }
 0x150   : > { %1124 = vmax.xlane.f32.xlu0 %v1123_v55 }
 0x151   : > { %1127 = vmax.xlane.f32.xlu1 %v1126_v56 }
 0x1a6   : > { %v1113_v57 = vpop.xlane.xlu1 %1112  ;;  %v1116_v0 = vpop.xlane.xlu2 %1115 }
 0x1a7   : > { %v1135_v58 = vsub.f32 %v925_v42, %v1113_v57  ;;  %v1136_v8 = vsub.f32 %v951_v43, %v1116_v0 }
 0x1a9   : > { %v1143_v59 = vmul.f32 1.442695, %v1135_v58  ;;  %v1145_v14 = vmul.f32 1.442695, %v1136_v8 }
 0x1ab   : > { %1922 = vpow2.f32 %v1143_v59 }
 0x1b1   : > { %v1923_v60 = vpop.eup %1922 }
 0x1b2   : > { %v1159_v62 = vsel %vm1110_vm2, %v1923_v60, 0.0 }
 0x1b3   : > { %v1119_v61 = vpop.xlane.xlu0 %1118  ;;  %1160 = vadd.xlane.f32.xlu1 %v1159_v62 }
 0x1b4   : > { %v1137_v63 = vsub.f32 %v977_v45, %v1119_v61 }
 0x1b6   : > { %v1147_v1 = vmul.f32 1.442695, %v1137_v63 }
 0x1b8   : > { %1924 = vpow2.f32 %v1147_v1  ;;  %v1391_v1 = vld [vmem:[%s2638_s3] sm:$0xf] }
 0x1bb   : > { %v1122_v2 = vpop.xlane.xlu0 %1121 }
 0x1bc   : > { %v1138_v3 = vsub.f32 %v1003_v46, %v1122_v2  ;;  %v1131_v4 = vpop.xlane.xlu1 %1130  ;;  %v1393_v2 = vld [vmem:[%s2638_s3 + $0x8] sm:$0xf] }
 0x1bd   : > { %v1134_v5 = vpop.xlane.xlu2 %1133  ;;  %v1141_v6 = vsub.f32 %v1081_v48, %v1131_v4  ;;  %v1392_v4 = vld [vmem:[%s2638_s3 + $0x4] sm:$0xf] }
 0x1be   : > { %v1925_v7 = vpop.eup %1924  ;;  %v1149_v9 = vmul.f32 1.442695, %v1138_v3  ;;  %v1142_v10 = vsub.f32 %v1107_v50, %v1134_v5  ;;  %v1394_v3 = vld [vmem:[%s2638_s3 + $0xc] sm:$0xf]  ;;  %v1397_v5 = vld [vmem:[%s2638_s3 + $0x18] sm:$0xf] }
 0x1bf   : > { %v1155_v11 = vmul.f32 1.442695, %v1141_v6  ;;  %v1165_v12 = vsel %vm1110_vm2, %v1925_v7, 0.0  ;;  %v1395_v6 = vld [vmem:[%s2638_s3 + $0x10] sm:$0xf] }
 0x1c0   : > { %1926 = vpow2.f32 %v1149_v9  ;;  %v1157_v13 = vmul.f32 1.442695, %v1142_v10  ;;  %1166 = vadd.xlane.f32.xlu2 %v1165_v12  ;;  %v1396_v9 = vld [vmem:[%s2638_s3 + $0x14] sm:$0xf] }
 0x1c1   : > { %1928 = vpow2.f32 %v1155_v11 }
 0x1c2   : > { %1930 = vpow2.f32 %v1157_v13 }
 0x1c3   : > { %v1125_v15 = vpop.xlane.xlu0 %1124  ;;  %1932 = vpow2.f32 %v1145_v14 }
 0x1c4   : > { %v1128_v17 = vpop.xlane.xlu1 %1127  ;;  %v1139_v18 = vsub.f32 %v1029_v53, %v1125_v15 }
 0x1c5   : > { %v1140_v20 = vsub.f32 %v1055_v54, %v1128_v17 }
 0x1c6   : > { %v1927_v19 = vpop.eup %1926  ;;  %v1151_v21 = vmul.f32 1.442695, %v1139_v18 }
 0x1c7   : > { %v1929_v22 = vpop.eup %1928  ;;  %v1168_v23 = vsel %vm1110_vm2, %v1927_v19, 0.0  ;;  %v1153_v27 = vmul.f32 1.442695, %v1140_v20 }
 0x1c8   : > { %v1931_v24 = vpop.eup %1930  ;;  %1934 = vpow2.f32 %v1151_v21  ;;  %v1177_v25 = vsel %vm1110_vm2, %v1929_v22, 0.0  ;;  %1169 = vadd.xlane.f32.xlu0 %v1168_v23 }
 0x1c9   : > { %v1180_v26 = vsel %vm1110_vm2, %v1931_v24, 0.0  ;;  %1178 = vadd.xlane.f32.xlu2 %v1177_v25  ;;  %v1933_v28 = vpop.eup %1932  ;;  %1936 = vpow2.f32 %v1153_v27 }
 0x1ca   : > { %1181 = vadd.xlane.f32.xlu1 %v1180_v26  ;;  %v1162_v30 = vsel %vm1110_vm2, %v1933_v28, 0.0 }
 0x1ce   : > { %v1935_v29 = vpop.eup %1934 }
 0x1cf   : > { %v1171_v31 = vsel %vm1110_vm2, %v1935_v29, 0.0  ;;  %v1937_v32 = vpop.eup %1936 }
 0x1d0   : > { %1163 = vadd.xlane.f32.xlu0 %v1162_v30  ;;  %v1174_v33 = vsel %vm1110_vm2, %v1937_v32, 0.0 }
 0x1d1   : > { %1172 = vadd.xlane.f32.xlu2 %v1171_v31 }
 0x1d8   : > { %1175 = vadd.xlane.f32.xlu0 %v1174_v33 }
 0x226   : > { %v1161_v34 = vpop.xlane.xlu1 %1160 }
 0x227   : > { %1938 = vrcp.f32 %v1161_v34 }
 0x22d   : > { %v1939_v35 = vpop.eup %1938 }
 0x22e   : > { %v1191_v36 = vmul.f32 0.17677669, %v1939_v35 }
 0x230   : > { %v1199_v37 = vmul.f32 %v1923_v60, %v1191_v36 }
 0x232   : > { %1830 = vmatmul.msk.f32.vlgmr.msra.gmra.mxu0 %vm1110_vm2, %v1199_v37 }
 0x233   : > { %v1167_v38 = vpop.xlane.xlu2 %1166  ;;  %1838 = vmatpush.msk.msra.mxu0 %vm1402_vm3, %v1391_v1 }
 0x234   : > { %1940 = vrcp.f32 %v1167_v38 }
 0x23a   : > { %v1941_v39 = vpop.eup %1940 }
 0x23b   : > { %v1193_v40 = vmul.f32 0.17677669, %v1941_v39  ;;  %v1170_v41 = vpop.xlane.xlu0 %1169  ;;  %v1921_v39 = vld [vmem:[%s2639_s4] ss:$0 sm:$0xff] }
 0x23c   : > { %v1179_v42 = vpop.xlane.xlu2 %1178  ;;  %1942 = vrcp.f32 %v1170_v41 }
 0x23d   : > { %v1201_v43 = vmul.f32 %v1925_v7, %v1193_v40  ;;  %1944 = vrcp.f32 %v1179_v42  ;;  %v1182_v16 = vpop.xlane.xlu1 %1181  ;;  %v1398_v7 = vld [vmem:[%s2638_s3 + $0x1c] sm:$0xf] }
 0x23e   : > { %1946 = vrcp.f32 %v1182_v16 }
 0x23f   : > { %1832 = vmatmul.msk.f32.vlgmr.msra.gmra.mxu2 %vm1110_vm2, %v1201_v43 }
 0x240   : > { %1842 = vmatpush.msk.msra.mxu2 %vm1402_vm3, %v1393_v2 }
 0x242   : > { %v1943_v44 = vpop.eup %1942 }
 0x243   : > { %v1945_v45 = vpop.eup %1944  ;;  %v1194_v46 = vmul.f32 0.17677669, %v1943_v44  ;;  %v1164_v47 = vpop.xlane.xlu0 %1163 }
 0x244   : > { %v1197_v48 = vmul.f32 0.17677669, %v1945_v45  ;;  %v1173_v49 = vpop.xlane.xlu2 %1172  ;;  %1948 = vrcp.f32 %v1164_v47  ;;  %v1947_v51 = vpop.eup %1946 }
 0x245   : > { %v1202_v50 = vmul.f32 %v1927_v19, %v1194_v46  ;;  %1950 = vrcp.f32 %v1173_v49  ;;  %v1198_v53 = vmul.f32 0.17677669, %v1947_v51 }
 0x246   : > { %v1205_v52 = vmul.f32 %v1929_v22, %v1197_v48 }
 0x247   : > { %1833 = vmatmul.msk.f32.vlgmr.msra.gmra.mxu3 %vm1110_vm2, %v1202_v50  ;;  %v1206_v59 = vmul.f32 %v1931_v24, %v1198_v53 }
 0x248   : > { %1836 = vmatmul.msk.f32.vlgmr.msrb.gmra.mxu2 %vm1110_vm2, %v1205_v52  ;;  %1844 = vmatpush.msk.msra.mxu3 %vm1402_vm3, %v1394_v3 }
 0x249   : > { %1850 = vmatpush.msk.msrb.mxu2 %vm1402_vm3, %v1397_v5 }
 0x24a   : > { %v1949_v54 = vpop.eup %1948 }
 0x24b   : > { %v1951_v55 = vpop.eup %1950  ;;  %v1192_v56 = vmul.f32 0.17677669, %v1949_v54  ;;  %v1176_v57 = vpop.xlane.xlu0 %1175 }
 0x24c   : > { %v1195_v58 = vmul.f32 0.17677669, %v1951_v55  ;;  %1952 = vrcp.f32 %v1176_v57 }
 0x24d   : > { %v1200_v60 = vmul.f32 %v1933_v28, %v1192_v56 }
 0x24e   : > { %v1203_v61 = vmul.f32 %v1935_v29, %v1195_v58 }
 0x24f   : > { %1831 = vmatmul.msk.f32.vlgmr.msra.gmra.mxu1 %vm1110_vm2, %v1200_v60  ;;  %1837 = vmatmul.msk.f32.vlgmr.msrb.gmra.mxu3 %vm1110_vm2, %v1206_v59 }
 0x250   : > { %1834 = vmatmul.msk.f32.vlgmr.msrb.gmra.mxu0 %vm1110_vm2, %v1203_v61  ;;  %1840 = vmatpush.msk.msra.mxu1 %vm1402_vm3, %v1392_v4 }
 0x251   : > { %1846 = vmatpush.msk.msrb.mxu0 %vm1402_vm3, %v1395_v6  ;;  %1852 = vmatpush.msk.msrb.mxu3 %vm1402_vm3, %v1398_v7 }
 0x252   : > { %v1953_v62 = vpop.eup %1952 }
 0x253   : > { %v1196_v63 = vmul.f32 0.17677669, %v1953_v62 }
 0x255   : > { %v1204_v0 = vmul.f32 %v1937_v32, %v1196_v63 }
 0x257   : > { %1835 = vmatmul.msk.f32.vlgmr.msrb.gmra.mxu1 %vm1110_vm2, %v1204_v0 }
 0x258   : > { %1848 = vmatpush.msk.msrb.mxu1 %vm1402_vm3, %v1396_v9 }
 0x2af   : > { %v1227_v8 = vpop.f32.mrf.mxu0 }
 0x2b0   : > { %1839 = vmatmul.msk.f32.vlgmr.msra.gmra.mxu0 %vm901_vm1, %v1227_v8 }
 0x2c2   : > { %v1273_v10 = vpop.f32.mrf.mxu2 }
 0x2c3   : > { %1843 = vmatmul.msk.f32.vlgmr.msra.gmra.mxu2 %vm901_vm1, %v1273_v10 }
 0x2ca   : > { %v1296_v11 = vpop.f32.mrf.mxu3 }
 0x2cb   : > { %v1365_v12 = vpop.f32.mrf.mxu2  ;;  %1845 = vmatmul.msk.f32.vlgmr.msra.gmra.mxu3 %vm901_vm1, %v1296_v11 }
 0x2cc   : > { %1851 = vmatmul.msk.f32.vlgmr.msrb.gmra.mxu2 %vm901_vm1, %v1365_v12  ;;  %v1250_v13 = vpop.f32.mrf.mxu1 }
 0x2cd   : > { %v1319_v14 = vpop.f32.mrf.mxu0  ;;  %1841 = vmatmul.msk.f32.vlgmr.msra.gmra.mxu1 %vm901_vm1, %v1250_v13 }
 0x2ce   : > { %1847 = vmatmul.msk.f32.vlgmr.msrb.gmra.mxu0 %vm901_vm1, %v1319_v14 }
 0x2d2   : > { %v1388_v15 = vpop.f32.mrf.mxu3 }
 0x2d3   : > { %1853 = vmatmul.msk.f32.vlgmr.msrb.gmra.mxu3 %vm901_vm1, %v1388_v15 }
 0x2d4   : > { %v1342_v17 = vpop.f32.mrf.mxu1 }
 0x2d5   : > { %1849 = vmatmul.msk.f32.vlgmr.msrb.gmra.mxu1 %vm901_vm1, %v1342_v17 }
 0x32d   : > { %v1423_v18 = vpop.f32.mrf.mxu0 }
 0x32e   : > { %v1608_v21 = vsel %vm285_vm0, %v1423_v18, 0.0 }
 0x346   : > { %v1475_v19 = vpop.f32.mrf.mxu2 }
 0x347   : > { %v1611_v24 = vsel %vm285_vm0, %v1475_v19, 0.0 }
 0x34a   : > { %v1449_v20 = vpop.f32.mrf.mxu1 }
 0x34b   : > { %v1609_v22 = vsel %vm285_vm0, %v1449_v20, 0.0  ;;  %v1527_v25 = vpop.f32.mrf.mxu0 }
 0x34c   : > { %v1610_v23 = vadd.f32 %v1609_v22, %v1608_v21  ;;  %v1615_v30 = vsel %vm285_vm0, %v1527_v25, 0.0 }
 0x34e   : > { %v1501_v26 = vpop.f32.mrf.mxu3  ;;  %v1612_v27 = vadd.f32 %v1611_v24, %v1610_v23 }
 0x34f   : > { %v1613_v28 = vsel %vm285_vm0, %v1501_v26, 0.0  ;;  %v1579_v31 = vpop.f32.mrf.mxu2 }
 0x350   : > { %v1614_v29 = vadd.f32 %v1613_v28, %v1612_v27  ;;  %v1619_v36 = vsel %vm285_vm0, %v1579_v31, 0.0 }
 0x352   : > { %v1553_v32 = vpop.f32.mrf.mxu1  ;;  %v1616_v33 = vadd.f32 %v1615_v30, %v1614_v29 }
 0x353   : > { %v1617_v34 = vsel %vm285_vm0, %v1553_v32, 0.0 }
 0x354   : > { %v1618_v35 = vadd.f32 %v1617_v34, %v1616_v33 }
 0x356   : > { %v1605_v37 = vpop.f32.mrf.mxu3  ;;  %v1620_v38 = vadd.f32 %v1619_v36, %v1618_v35 }
 0x357   : > { %v1621_v40 = vsel %vm285_vm0, %v1605_v37, 0.0 }
 0x358   : > { %v1622_v41 = vadd.f32 %v1621_v40, %v1620_v38 }
 0x35a   : > { %v1627_v42 = vadd.f32 %v1921_v39, %v1622_v41 }
 0x35c   : > { %1628 = vst.msk [vmem:[%s215_s22] sm:$0xff] %vm285_vm0, %v1627_v42 }
 0x35d   : > { %1981 = shalt.err (!%p1978_p3)
}
 0x35e   : > { %1858 = dma.vmem_to_hbm [thread:$0]  (%p2086_p5), %s1643_s23, 128, %s1645_s25, %s1630_s26  }
 0x35f PF: > { %p1864_p4 = scmp.ge.s32.totalorder %s2016_s21, 2  ;;  %s1656_s7 = sand.u32 1, %s2004_s18  }
 0x360   : > { %s1657_s13 = scalar_lea.sflag [#allocation3], %s1656_s7 }
 0x361   : > { %p1861_p7 = pnand %p1864_p4, %p2090_p6 }
 0x363   : > { %p1862_p8 = pneg %p1861_p7 }
 0x365   : > { %1999 = dma.done.wait (%p1862_p8), %s1657_s13, 128  }
 0x366   : > { %2001 = vsyncadd (%p1862_p8), %s1657_s13, 4294967168  ;;  %p15_p9 = scmp.ge.s32.totalorder %s2073_s24, 4   ;;  %s2643_s18 = smov %s2008_s19 }
 0x367   : > { %s2644_s19 = smov %s2012_s20  ;;  %s2645_s20 = smov %s2084_s27 }
 0x368   : > { %s2646_s21 = smov %s2073_s24  ;;  %17 = sbr.rel (!%p15_p9) target bundleno = 3 (0x3), region = 79 }
 0x36d   :  { %1663 = vsyncpa [#allocation3], 1 }
 0x36e   :  { %1665 = vsyncpa [#allocation3 + $0x1], 1 }

</bundles_post_ra>
